<compile_context>
chip_gen: v6e
topology: v6e:2x2x1
jax: 0.10.0
libtpu: 0.0.40
codegen_flags: <defaults>
</compile_context>

<pallas_src>
import functools

import jax
import jax.numpy as jnp
from jax.experimental import pallas as pl
from jax.experimental.pallas import tpu as pltpu

# ---------------- small, forward-consistent hyperparameters -----------------
IMG_SIZE = 64          # torch default 4096
NUM_TOKENS = 128       # torch default 8192
EMBED_DIM = 32         # torch default 512
NUM_HEADS = 4
DIM_FF = 64            # torch default 256
NUM_LAYERS = 2         # torch default 4
MAX_SEQ_LEN = 16       # torch default 128
LN_EPS = 1e-5

# Tuning flags (see header comments):
MATMUL_IN_BF16 = False            # set True at torch-default D=512 on v6e/v7x
APPROX_SOFTMAX_RECIPROCAL = True  # False -> exact divide for parity checks

# rows of the packed per-layer vector-parameter block (lane-padded to 3*D):
#   0: b_qkv  1: b_o  2: ln1_g  3: ln1_b  4: b1  5: b2  6: ln2_g  7: ln2_b
_NUM_VEC_ROWS = 8


# --------------------------- Pallas kernel ----------------------------------
def _encoder_layer_kernel(x_ref, wqkv_ref, wo_ref, w1_ref, w2_ref, vec_ref,
                          out_ref, *, num_heads):
    """One post-norm TransformerEncoderLayer for one batch element.

    grid = (B, L); batch axis "parallel", layer axis "arbitrary".
    The activation is carried across the layer axis in the resident out block.

    x_ref:    (S, D)    input embeddings for this batch element
    wqkv_ref: (D, 3D)   packed QKV projection (pre-transposed)
    wo_ref:   (D, D)    attention output projection
    w1_ref:   (D, F)    FFN first linear
    w2_ref:   (F, D)    FFN second linear
    vec_ref:  (8, 3D)   packed biases / LayerNorm params (rows zero-padded)
    out_ref:  (S, D)    resident activation / final output
    """
    layer = pl.program_id(1)

    @pl.when(layer == 0)
    def _():                                # seed the resident activation
        out_ref[...] = x_ref[...]

    h = out_ref[...].astype(jnp.float32)    # (S, D)
    S, D = h.shape
    Dh = D // num_heads
    F = w1_ref.shape[-1]
    scale = 1.0 / jnp.sqrt(jnp.float32(Dh))
    cdt = wqkv_ref.dtype                    # MXU operand dtype (f32 or bf16)

    vec = vec_ref[...].astype(jnp.float32)  # (8, 3D)
    b_qkv = vec[0:1, :]                     # (1, 3D)
    b_o = vec[1:2, :D]
    ln1_g = vec[2:3, :D]
    ln1_b = vec[3:4, :D]
    b1 = vec[4:5, :F]
    b2 = vec[5:6, :D]
    ln2_g = vec[6:7, :D]
    ln2_b = vec[7:8, :D]

    def layer_norm(y, g, b):
        mu = jnp.mean(y, axis=-1, keepdims=True)
        var = jnp.mean((y - mu) ** 2, axis=-1, keepdims=True)  # biased (torch)
        return (y - mu) * jax.lax.rsqrt(var + LN_EPS) * g + b

    # ---- multi-head self attention (per batch element: no batch mask) ------
    qkv = jnp.dot(h.astype(cdt), wqkv_ref[...],
                  preferred_element_type=jnp.float32) + b_qkv      # (S, 3D)
    q = qkv[:, 0 * D:1 * D] * scale         # scale folded into q once
    k = qkv[:, 1 * D:2 * D]
    v = qkv[:, 2 * D:3 * D]

    wo = wo_ref[...]
    attn = jnp.zeros((S, D), jnp.float32)
    for hd in range(num_heads):             # static small loop (Dh=8 toy shape)
        sl = slice(hd * Dh, (hd + 1) * Dh)
        # contract on dim 1 of both operands -> no explicit k.T transpose
        s = jax.lax.dot_general(
            q[:, sl], k[:, sl],
            dimension_numbers=(((1,), (1,)), ((), ())),
            preferred_element_type=jnp.float32)                    # (S, S)
        m = jnp.max(s, axis=-1, keepdims=True)
        p = jnp.exp(s - m)
        denom = jnp.sum(p, axis=-1, keepdims=True)
        if APPROX_SOFTMAX_RECIPROCAL:
            p = p * pl.reciprocal(denom, approx=True)
        else:
            p = p / denom
        ctx = jnp.dot(p, v[:, sl], preferred_element_type=jnp.float32)  # (S,Dh)
        # fold the output projection into the head loop -> no lane concat
        attn = attn + jnp.dot(ctx.astype(cdt), wo[sl, :],
                              preferred_element_type=jnp.float32)
    attn = attn + b_o

    h = layer_norm(h + attn, ln1_g, ln1_b)

    # ---- feed forward -------------------------------------------------------
    ff = jnp.dot(h.astype(cdt), w1_ref[...],
                 preferred_element_type=jnp.float32) + b1
    ff = jnp.maximum(ff, 0.0)                                       # relu
    ff = jnp.dot(ff.astype(cdt), w2_ref[...],
                 preferred_element_type=jnp.float32) + b2
    h = layer_norm(h + ff, ln2_g, ln2_b)

    out_ref[...] = h.astype(out_ref.dtype)


def encoder_stack_pallas(x, stacked):
    """x: (B, S, D) float32 embeddings. Runs the whole encoder stack."""
    B, S, D = x.shape
    L = stacked["w_qkv"].shape[0]
    F = stacked["w1"].shape[-1]

    kernel = functools.partial(_encoder_layer_kernel, num_heads=NUM_HEADS)

    out = pl.pallas_call(
        kernel,
        out_shape=jax.ShapeDtypeStruct((B, S, D), jnp.float32),
        grid=(B, L),                       # layer axis innermost (fastest)
        in_specs=[
            pl.BlockSpec((None, S, D), lambda b, l: (b, 0, 0)),            # x
            pl.BlockSpec((None, D, 3 * D), lambda b, l: (l, 0, 0)),        # w_qkv
            pl.BlockSpec((None, D, D), lambda b, l: (l, 0, 0)),            # w_o
            pl.BlockSpec((None, D, F), lambda b, l: (l, 0, 0)),            # w1
            pl.BlockSpec((None, F, D), lambda b, l: (l, 0, 0)),            # w2
            pl.BlockSpec((None, _NUM_VEC_ROWS, 3 * D),
                         lambda b, l: (l, 0, 0)),                          # vec
        ],
        # same output block index across the layer axis -> resident activation
        out_specs=pl.BlockSpec((None, S, D), lambda b, l: (b, 0, 0)),
        compiler_params=pltpu.CompilerParams(
            dimension_semantics=("parallel", "arbitrary")),
    )(x, stacked["w_qkv"], stacked["w_o"], stacked["w1"], stacked["w2"],
      stacked["vec"])
    return out


# --------------------------- parameter setup --------------------------------
def _pad_row(v, width):
    v = v.astype(jnp.float32).reshape(-1)
    return jnp.zeros((width,), jnp.float32).at[:v.shape[0]].set(v)


def stack_layer_params(layers):
    wdt = jnp.bfloat16 if MATMUL_IN_BF16 else jnp.float32
    width = 3 * EMBED_DIM
    vec_blocks = []
    for l in layers:
        rows = [l["b_qkv"], l["b_o"], l["ln1_g"], l["ln1_b"],
                l["b1"], l["b2"], l["ln2_g"], l["ln2_b"]]
        assert len(rows) == _NUM_VEC_ROWS
        vec_blocks.append(jnp.stack([_pad_row(r, width) for r in rows]))
    return {
        "w_qkv": jnp.stack([l["w_qkv"] for l in layers]).astype(wdt),  # (L,D,3D)
        "w_o":   jnp.stack([l["w_o"] for l in layers]).astype(wdt),    # (L,D,D)
        "w1":    jnp.stack([l["w1"] for l in layers]).astype(wdt),     # (L,D,F)
        "w2":    jnp.stack([l["w2"] for l in layers]).astype(wdt),     # (L,F,D)
        "vec":   jnp.stack(vec_blocks),                                # (L,8,3D)
    }


def init_params(key):
    def nrm(k, shape, scale=0.02):
        return (scale * jax.random.normal(k, shape)).astype(jnp.float32)

    keys = jax.random.split(key, 3 + NUM_LAYERS)
    params = {
        "word_emb": nrm(keys[0], (NUM_TOKENS, EMBED_DIM)),
        "bbox_emb": nrm(keys[1], (2 * IMG_SIZE, EMBED_DIM)),
        # torch.rand -> uniform [0, 1)
        "pos_emb": jax.random.uniform(keys[2], (1, MAX_SEQ_LEN, EMBED_DIM),
                                      dtype=jnp.float32),
    }
    D, F = EMBED_DIM, DIM_FF
    layers = []
    for li in range(NUM_LAYERS):
        lk = jax.random.split(keys[3 + li], 8)
        # weights stored pre-transposed so the kernel computes x @ W
        layers.append({
            "w_qkv": nrm(lk[0], (D, 3 * D)),
            "b_qkv": nrm(lk[1], (3 * D,)),
            "w_o":   nrm(lk[2], (D, D)),
            "b_o":   nrm(lk[3], (D,)),
            "ln1_g": jnp.ones((D,), jnp.float32),
            "ln1_b": jnp.zeros((D,), jnp.float32),
            "w1":    nrm(lk[4], (D, F)),
            "b1":    nrm(lk[5], (F,)),
            "w2":    nrm(lk[6], (F, D)),
            "b2":    nrm(lk[7], (D,)),
            "ln2_g": jnp.ones((D,), jnp.float32),
            "ln2_b": jnp.zeros((D,), jnp.float32),
        })
    params["stacked"] = stack_layer_params(layers)
    return params


# --------------------------- full forward -----------------------------------
def embed_inputs(x_int, params):
    """x_int: (B, S, 5) int32 = [token, x1, y1, x2, y2] -> (B, S, D) f32."""
    # TODO(synk): if the toy shape is the deployment shape, fuse these 5 row
    # gathers + mean + positional add into the kernel via scalar-prefetched
    # indices (PrefetchScalarGridSpec + pl.Element row gather) to amortize the
    # launch-bound prologue; kept in XLA here.
    tok = params["word_emb"][x_int[:, :, 0]]
    x1 = params["bbox_emb"][x_int[:, :, 1]]
    y1 = params["bbox_emb"][x_int[:, :, 2] + IMG_SIZE]
    x2 = params["bbox_emb"][x_int[:, :, 3]]
    y2 = params["bbox_emb"][x_int[:, :, 4] + IMG_SIZE]
    combined = (tok + x1 + y1 + x2 + y2) / 5.0            # mean over the stack
    return combined + params["pos_emb"][:, :combined.shape[1], :]


def transformer_encoder_forward(x_int, params):
    h = embed_inputs(x_int, params)
    # self.dropout / layer dropouts are identity in eval mode.
    return encoder_stack_pallas(h, params["stacked"])


# --------------------------- pure-JAX reference -----------------------------
def encoder_stack_reference(x, stacked):
    B, S, D = x.shape
    H, Dh = NUM_HEADS, D // NUM_HEADS
    L = stacked["w_qkv"].shape[0]
    F = stacked["w1"].shape[-1]

    def layer_norm(y, g, b):
        mu = jnp.mean(y, axis=-1, keepdims=True)
        var = jnp.mean((y - mu) ** 2, axis=-1, keepdims=True)
        return (y - mu) * jax.lax.rsqrt(var + LN_EPS) * g + b

    h = x
    for l in range(L):
        wqkv = stacked["w_qkv"][l].astype(jnp.float32)
        wo = stacked["w_o"][l].astype(jnp.float32)
        w1 = stacked["w1"][l].astype(jnp.float32)
        w2 = stacked["w2"][l].astype(jnp.float32)
        vec = stacked["vec"][l]
        b_qkv, b_o = vec[0, :], vec[1, :D]
        ln1_g, ln1_b = vec[2, :D], vec[3, :D]
        b1, b2 = vec[4, :F], vec[5, :D]
        ln2_g, ln2_b = vec[6, :D], vec[7, :D]

        qkv = h @ wqkv + b_qkv
        q, k, v = qkv[..., :D], qkv[..., D:2 * D], qkv[..., 2 * D:]
        q = q.reshape(B, S, H, Dh).transpose(0, 2, 1, 3)
        k = k.reshape(B, S, H, Dh).transpose(0, 2, 1, 3)
        v = v.reshape(B, S, H, Dh).transpose(0, 2, 1, 3)
        s = jnp.einsum("bhqd,bhkd->bhqk", q, k) / jnp.sqrt(jnp.float32(Dh))
        p = jax.nn.softmax(s, axis=-1)
        ctx = jnp.einsum("bhqk,bhkd->bhqd", p, v)
        ctx = ctx.transpose(0, 2, 1, 3).reshape(B, S, D)
        attn = ctx @ wo + b_o

        h = layer_norm(h + attn, ln1_g, ln1_b)
        ff = jnp.maximum(h @ w1 + b1, 0.0)
        ff = ff @ w2 + b2
        h = layer_norm(h + ff, ln2_g, ln2_b)
    return h


# ------------------------------- main ----------------------------------------
if __name__ == "__main__":
    key = jax.random.PRNGKey(0)
    pkey, xkey = jax.random.split(key)

    params = init_params(pkey)

    B, S = 2, 8
    k_tok, k_box = jax.random.split(xkey)
    tokens = jax.random.randint(k_tok, (B, S, 1), 0, NUM_TOKENS, dtype=jnp.int32)
    boxes = jax.random.randint(k_box, (B, S, 4), 0, IMG_SIZE, dtype=jnp.int32)
    x = jnp.concatenate([tokens, boxes], axis=-1)          # (B, S, 5) int32

    fwd = jax.jit(transformer_encoder_forward)
    out = fwd(x, params)
    jax.block_until_ready(out)

    assert out.shape == (B, S, EMBED_DIM)
    assert bool(jnp.all(jnp.isfinite(out)))

    # correctness vs pure-JAX reference (approx softmax reciprocal -> loose tol)
    ref = encoder_stack_reference(embed_inputs(x, params), params["stacked"])
    if not bool(jnp.allclose(out, ref, atol=5e-3, rtol=5e-3)):
        raise RuntimeError(
            f"kernel/reference mismatch, max abs err "
            f"{float(jnp.max(jnp.abs(out - ref)))}")

    print("KERNEL_OK")
</pallas_src>

<mosaic_0001>
module attributes {stable_mosaic.version = 11 : i64} {
  func.func @_encoder_layer_kernel(%arg0: i32, %arg1: i32, %arg2: memref<1x8x32xf32, #tpu.memory_space<vmem>>, %arg3: memref<1x32x96xf32, #tpu.memory_space<vmem>>, %arg4: memref<1x32x32xf32, #tpu.memory_space<vmem>>, %arg5: memref<1x32x64xf32, #tpu.memory_space<vmem>>, %arg6: memref<1x64x32xf32, #tpu.memory_space<vmem>>, %arg7: memref<1x8x96xf32, #tpu.memory_space<vmem>>, %arg8: memref<1x8x32xf32, #tpu.memory_space<vmem>>) attributes {dimension_semantics = [#tpu.dimension_semantics<parallel>, #tpu.dimension_semantics<arbitrary>], iteration_bounds = array<i64: 2, 2>, scalar_prefetch = 0 : i64, scratch_operands = 0 : i64, tpu.core_type = #tpu.core_type<tc>, window_params = [{transform_indices = @transform_0, window_bounds = array<i64: 1, 8, 32>}, {transform_indices = @transform_1, window_bounds = array<i64: 1, 32, 96>}, {transform_indices = @transform_2, window_bounds = array<i64: 1, 32, 32>}, {transform_indices = @transform_3, window_bounds = array<i64: 1, 32, 64>}, {transform_indices = @transform_4, window_bounds = array<i64: 1, 64, 32>}, {transform_indices = @transform_5, window_bounds = array<i64: 1, 8, 96>}, {transform_indices = @transform_6, window_bounds = array<i64: 1, 8, 32>}]} {
    %c0_i32 = arith.constant 0 : i32
    %0 = arith.cmpi eq, %arg1, %c0_i32 : i32
    %1 = arith.extui %0 : i1 to i32
    %c0_i32_0 = arith.constant 0 : i32
    %2 = arith.cmpi ne, %1, %c0_i32_0 : i32
    scf.if %2 {
      %c0_57 = arith.constant 0 : index
      %c0_58 = arith.constant 0 : index
      %c0_59 = arith.constant 0 : index
      %165 = vector.load %arg2[%c0_57, %c0_58, %c0_59] : memref<1x8x32xf32, #tpu.memory_space<vmem>>, vector<1x8x32xf32>
      %166 = vector.shape_cast %165 : vector<1x8x32xf32> to vector<8x32xf32>
      %c0_60 = arith.constant 0 : index
      %c0_61 = arith.constant 0 : index
      %c0_62 = arith.constant 0 : index
      %167 = vector.load %arg8[%c0_60, %c0_61, %c0_62] : memref<1x8x32xf32, #tpu.memory_space<vmem>>, vector<1x8x32xf32>
      %168 = vector.shape_cast %167 : vector<1x8x32xf32> to vector<8x32xf32>
      %169 = vector.shape_cast %166 : vector<8x32xf32> to vector<1x8x32xf32>
      tpu.vector_store %arg8[%c0_60, %c0_61, %c0_62], %169 {strides = array<i32>} : memref<1x8x32xf32, #tpu.memory_space<vmem>>, vector<1x8x32xf32>,
    } else {
    }
    %c0 = arith.constant 0 : index
    %c0_1 = arith.constant 0 : index
    %c0_2 = arith.constant 0 : index
    %3 = vector.load %arg8[%c0, %c0_1, %c0_2] : memref<1x8x32xf32, #tpu.memory_space<vmem>>, vector<1x8x32xf32>
    %4 = vector.shape_cast %3 : vector<1x8x32xf32> to vector<8x32xf32>
    %cst = arith.constant 8.000000e+00 : f32
    %5 = math.sqrt %cst : f32
    %cst_3 = arith.constant 1.000000e+00 : f32
    %6 = arith.divf %cst_3, %5 : f32
    %c0_4 = arith.constant 0 : index
    %c0_5 = arith.constant 0 : index
    %c0_6 = arith.constant 0 : index
    %7 = vector.load %arg7[%c0_4, %c0_5, %c0_6] : memref<1x8x96xf32, #tpu.memory_space<vmem>>, vector<1x8x96xf32>
    %8 = vector.shape_cast %7 : vector<1x8x96xf32> to vector<8x96xf32>
    %9 = vector.extract_strided_slice %8 {offsets = [0, 0], sizes = [1, 96], strides = [1, 1]} : vector<8x96xf32> to vector<1x96xf32>
    %10 = vector.extract_strided_slice %8 {offsets = [1, 0], sizes = [1, 32], strides = [1, 1]} : vector<8x96xf32> to vector<1x32xf32>
    %11 = vector.extract_strided_slice %8 {offsets = [2, 0], sizes = [1, 32], strides = [1, 1]} : vector<8x96xf32> to vector<1x32xf32>
    %12 = vector.extract_strided_slice %8 {offsets = [3, 0], sizes = [1, 32], strides = [1, 1]} : vector<8x96xf32> to vector<1x32xf32>
    %13 = vector.extract_strided_slice %8 {offsets = [4, 0], sizes = [1, 64], strides = [1, 1]} : vector<8x96xf32> to vector<1x64xf32>
    %14 = vector.extract_strided_slice %8 {offsets = [5, 0], sizes = [1, 32], strides = [1, 1]} : vector<8x96xf32> to vector<1x32xf32>
    %15 = vector.extract_strided_slice %8 {offsets = [6, 0], sizes = [1, 32], strides = [1, 1]} : vector<8x96xf32> to vector<1x32xf32>
    %16 = vector.extract_strided_slice %8 {offsets = [7, 0], sizes = [1, 32], strides = [1, 1]} : vector<8x96xf32> to vector<1x32xf32>
    %c0_7 = arith.constant 0 : index
    %c0_8 = arith.constant 0 : index
    %c0_9 = arith.constant 0 : index
    %17 = vector.load %arg3[%c0_7, %c0_8, %c0_9] : memref<1x32x96xf32, #tpu.memory_space<vmem>>, vector<1x32x96xf32>
    %18 = vector.shape_cast %17 : vector<1x32x96xf32> to vector<32x96xf32>
    %cst_10 = arith.constant dense<0.000000e+00> : vector<8x96xf32>
    %19 = tpu.matmul %4, %18, %cst_10 {dimension_numbers = #tpu.dot_dimension_numbers<[1], [0], [0], [1], [0, 0, 1, 1], [], []>} : vector<8x32xf32>, vector<32x96xf32>, vector<8x96xf32> -> vector<8x96xf32>
    %20 = vector.broadcast %9 : vector<1x96xf32> to vector<8x96xf32>
    %21 = arith.addf %19, %20 : vector<8x96xf32>
    %22 = vector.extract_strided_slice %21 {offsets = [0, 0], sizes = [8, 32], strides = [1, 1]} : vector<8x96xf32> to vector<8x32xf32>
    %23 = vector.broadcast %6 : f32 to vector<8x32xf32>
    %24 = arith.mulf %22, %23 : vector<8x32xf32>
    %25 = vector.extract_strided_slice %21 {offsets = [0, 32], sizes = [8, 32], strides = [1, 1]} : vector<8x96xf32> to vector<8x32xf32>
    %26 = vector.extract_strided_slice %21 {offsets = [0, 64], sizes = [8, 32], strides = [1, 1]} : vector<8x96xf32> to vector<8x32xf32>
    %c0_11 = arith.constant 0 : index
    %c0_12 = arith.constant 0 : index
    %c0_13 = arith.constant 0 : index
    %27 = vector.load %arg4[%c0_11, %c0_12, %c0_13] : memref<1x32x32xf32, #tpu.memory_space<vmem>>, vector<1x32x32xf32>
    %28 = vector.shape_cast %27 : vector<1x32x32xf32> to vector<32x32xf32>
    %cst_14 = arith.constant 0.000000e+00 : f32
    %29 = vector.broadcast %cst_14 : f32 to vector<8x32xf32>
    %30 = vector.extract_strided_slice %24 {offsets = [0, 0], sizes = [8, 8], strides = [1, 1]} : vector<8x32xf32> to vector<8x8xf32>
    %31 = vector.extract_strided_slice %25 {offsets = [0, 0], sizes = [8, 8], strides = [1, 1]} : vector<8x32xf32> to vector<8x8xf32>
    %cst_15 = arith.constant dense<0.000000e+00> : vector<8x8xf32>
    %32 = tpu.matmul %30, %31, %cst_15 {dimension_numbers = #tpu.dot_dimension_numbers<[1], [1], [0], [0], [0, 0, 1, 0], [], []>} : vector<8x8xf32>, vector<8x8xf32>, vector<8x8xf32> -> vector<8x8xf32>
    %cst_16 = arith.constant dense<0xFF800000> : vector<8xf32>
    %33 = vector.multi_reduction <maximumf>, %32, %cst_16 [1] : vector<8x8xf32> to vector<8xf32>
    %34 = vector.shape_cast %33 : vector<8xf32> to vector<8x1xf32>
    %35 = vector.broadcast %34 : vector<8x1xf32> to vector<8x8xf32>
    %36 = arith.subf %32, %35 : vector<8x8xf32>
    %37 = math.exp %36 : vector<8x8xf32>
    %cst_17 = arith.constant dense<0.000000e+00> : vector<8xf32>
    %38 = vector.multi_reduction <add>, %37, %cst_17 [1] : vector<8x8xf32> to vector<8xf32>
    %39 = vector.shape_cast %38 : vector<8xf32> to vector<8x1xf32>
    %40 = tpu.reciprocal %39 {approx = true} : vector<8x1xf32> -> vector<8x1xf32>
    %41 = vector.broadcast %40 : vector<8x1xf32> to vector<8x8xf32>
    %42 = arith.mulf %37, %41 : vector<8x8xf32>
    %43 = vector.extract_strided_slice %26 {offsets = [0, 0], sizes = [8, 8], strides = [1, 1]} : vector<8x32xf32> to vector<8x8xf32>
    %cst_18 = arith.constant dense<0.000000e+00> : vector<8x8xf32>
    %44 = tpu.matmul %42, %43, %cst_18 {dimension_numbers = #tpu.dot_dimension_numbers<[1], [0], [0], [1], [0, 0, 1, 1], [], []>} : vector<8x8xf32>, vector<8x8xf32>, vector<8x8xf32> -> vector<8x8xf32>
    %45 = vector.extract_strided_slice %28 {offsets = [0, 0], sizes = [8, 32], strides = [1, 1]} : vector<32x32xf32> to vector<8x32xf32>
    %cst_19 = arith.constant dense<0.000000e+00> : vector<8x32xf32>
    %46 = tpu.matmul %44, %45, %cst_19 {dimension_numbers = #tpu.dot_dimension_numbers<[1], [0], [0], [1], [0, 0, 1, 1], [], []>} : vector<8x8xf32>, vector<8x32xf32>, vector<8x32xf32> -> vector<8x32xf32>
    %47 = arith.addf %29, %46 : vector<8x32xf32>
    %48 = vector.extract_strided_slice %24 {offsets = [0, 8], sizes = [8, 8], strides = [1, 1]} : vector<8x32xf32> to vector<8x8xf32>
    %49 = vector.extract_strided_slice %25 {offsets = [0, 8], sizes = [8, 8], strides = [1, 1]} : vector<8x32xf32> to vector<8x8xf32>
    %cst_20 = arith.constant dense<0.000000e+00> : vector<8x8xf32>
    %50 = tpu.matmul %48, %49, %cst_20 {dimension_numbers = #tpu.dot_dimension_numbers<[1], [1], [0], [0], [0, 0, 1, 0], [], []>} : vector<8x8xf32>, vector<8x8xf32>, vector<8x8xf32> -> vector<8x8xf32>
    %cst_21 = arith.constant dense<0xFF800000> : vector<8xf32>
    %51 = vector.multi_reduction <maximumf>, %50, %cst_21 [1] : vector<8x8xf32> to vector<8xf32>
    %52 = vector.shape_cast %51 : vector<8xf32> to vector<8x1xf32>
    %53 = vector.broadcast %52 : vector<8x1xf32> to vector<8x8xf32>
    %54 = arith.subf %50, %53 : vector<8x8xf32>
    %55 = math.exp %54 : vector<8x8xf32>
    %cst_22 = arith.constant dense<0.000000e+00> : vector<8xf32>
    %56 = vector.multi_reduction <add>, %55, %cst_22 [1] : vector<8x8xf32> to vector<8xf32>
    %57 = vector.shape_cast %56 : vector<8xf32> to vector<8x1xf32>
    %58 = tpu.reciprocal %57 {approx = true} : vector<8x1xf32> -> vector<8x1xf32>
    %59 = vector.broadcast %58 : vector<8x1xf32> to vector<8x8xf32>
    %60 = arith.mulf %55, %59 : vector<8x8xf32>
    %61 = vector.extract_strided_slice %26 {offsets = [0, 8], sizes = [8, 8], strides = [1, 1]} : vector<8x32xf32> to vector<8x8xf32>
    %cst_23 = arith.constant dense<0.000000e+00> : vector<8x8xf32>
    %62 = tpu.matmul %60, %61, %cst_23 {dimension_numbers = #tpu.dot_dimension_numbers<[1], [0], [0], [1], [0, 0, 1, 1], [], []>} : vector<8x8xf32>, vector<8x8xf32>, vector<8x8xf32> -> vector<8x8xf32>
    %63 = vector.extract_strided_slice %28 {offsets = [8, 0], sizes = [8, 32], strides = [1, 1]} : vector<32x32xf32> to vector<8x32xf32>
    %cst_24 = arith.constant dense<0.000000e+00> : vector<8x32xf32>
    %64 = tpu.matmul %62, %63, %cst_24 {dimension_numbers = #tpu.dot_dimension_numbers<[1], [0], [0], [1], [0, 0, 1, 1], [], []>} : vector<8x8xf32>, vector<8x32xf32>, vector<8x32xf32> -> vector<8x32xf32>
    %65 = arith.addf %47, %64 : vector<8x32xf32>
    %66 = vector.extract_strided_slice %24 {offsets = [0, 16], sizes = [8, 8], strides = [1, 1]} : vector<8x32xf32> to vector<8x8xf32>
    %67 = vector.extract_strided_slice %25 {offsets = [0, 16], sizes = [8, 8], strides = [1, 1]} : vector<8x32xf32> to vector<8x8xf32>
    %cst_25 = arith.constant dense<0.000000e+00> : vector<8x8xf32>
    %68 = tpu.matmul %66, %67, %cst_25 {dimension_numbers = #tpu.dot_dimension_numbers<[1], [1], [0], [0], [0, 0, 1, 0], [], []>} : vector<8x8xf32>, vector<8x8xf32>, vector<8x8xf32> -> vector<8x8xf32>
    %cst_26 = arith.constant dense<0xFF800000> : vector<8xf32>
    %69 = vector.multi_reduction <maximumf>, %68, %cst_26 [1] : vector<8x8xf32> to vector<8xf32>
    %70 = vector.shape_cast %69 : vector<8xf32> to vector<8x1xf32>
    %71 = vector.broadcast %70 : vector<8x1xf32> to vector<8x8xf32>
    %72 = arith.subf %68, %71 : vector<8x8xf32>
    %73 = math.exp %72 : vector<8x8xf32>
    %cst_27 = arith.constant dense<0.000000e+00> : vector<8xf32>
    %74 = vector.multi_reduction <add>, %73, %cst_27 [1] : vector<8x8xf32> to vector<8xf32>
    %75 = vector.shape_cast %74 : vector<8xf32> to vector<8x1xf32>
    %76 = tpu.reciprocal %75 {approx = true} : vector<8x1xf32> -> vector<8x1xf32>
    %77 = vector.broadcast %76 : vector<8x1xf32> to vector<8x8xf32>
    %78 = arith.mulf %73, %77 : vector<8x8xf32>
    %79 = vector.extract_strided_slice %26 {offsets = [0, 16], sizes = [8, 8], strides = [1, 1]} : vector<8x32xf32> to vector<8x8xf32>
    %cst_28 = arith.constant dense<0.000000e+00> : vector<8x8xf32>
    %80 = tpu.matmul %78, %79, %cst_28 {dimension_numbers = #tpu.dot_dimension_numbers<[1], [0], [0], [1], [0, 0, 1, 1], [], []>} : vector<8x8xf32>, vector<8x8xf32>, vector<8x8xf32> -> vector<8x8xf32>
    %81 = vector.extract_strided_slice %28 {offsets = [16, 0], sizes = [8, 32], strides = [1, 1]} : vector<32x32xf32> to vector<8x32xf32>
    %cst_29 = arith.constant dense<0.000000e+00> : vector<8x32xf32>
    %82 = tpu.matmul %80, %81, %cst_29 {dimension_numbers = #tpu.dot_dimension_numbers<[1], [0], [0], [1], [0, 0, 1, 1], [], []>} : vector<8x8xf32>, vector<8x32xf32>, vector<8x32xf32> -> vector<8x32xf32>
    %83 = arith.addf %65, %82 : vector<8x32xf32>
    %84 = vector.extract_strided_slice %24 {offsets = [0, 24], sizes = [8, 8], strides = [1, 1]} : vector<8x32xf32> to vector<8x8xf32>
    %85 = vector.extract_strided_slice %25 {offsets = [0, 24], sizes = [8, 8], strides = [1, 1]} : vector<8x32xf32> to vector<8x8xf32>
    %cst_30 = arith.constant dense<0.000000e+00> : vector<8x8xf32>
    %86 = tpu.matmul %84, %85, %cst_30 {dimension_numbers = #tpu.dot_dimension_numbers<[1], [1], [0], [0], [0, 0, 1, 0], [], []>} : vector<8x8xf32>, vector<8x8xf32>, vector<8x8xf32> -> vector<8x8xf32>
    %cst_31 = arith.constant dense<0xFF800000> : vector<8xf32>
    %87 = vector.multi_reduction <maximumf>, %86, %cst_31 [1] : vector<8x8xf32> to vector<8xf32>
    %88 = vector.shape_cast %87 : vector<8xf32> to vector<8x1xf32>
    %89 = vector.broadcast %88 : vector<8x1xf32> to vector<8x8xf32>
    %90 = arith.subf %86, %89 : vector<8x8xf32>
    %91 = math.exp %90 : vector<8x8xf32>
    %cst_32 = arith.constant dense<0.000000e+00> : vector<8xf32>
    %92 = vector.multi_reduction <add>, %91, %cst_32 [1] : vector<8x8xf32> to vector<8xf32>
    %93 = vector.shape_cast %92 : vector<8xf32> to vector<8x1xf32>
    %94 = tpu.reciprocal %93 {approx = true} : vector<8x1xf32> -> vector<8x1xf32>
    %95 = vector.broadcast %94 : vector<8x1xf32> to vector<8x8xf32>
    %96 = arith.mulf %91, %95 : vector<8x8xf32>
    %97 = vector.extract_strided_slice %26 {offsets = [0, 24], sizes = [8, 8], strides = [1, 1]} : vector<8x32xf32> to vector<8x8xf32>
    %cst_33 = arith.constant dense<0.000000e+00> : vector<8x8xf32>
    %98 = tpu.matmul %96, %97, %cst_33 {dimension_numbers = #tpu.dot_dimension_numbers<[1], [0], [0], [1], [0, 0, 1, 1], [], []>} : vector<8x8xf32>, vector<8x8xf32>, vector<8x8xf32> -> vector<8x8xf32>
    %99 = vector.extract_strided_slice %28 {offsets = [24, 0], sizes = [8, 32], strides = [1, 1]} : vector<32x32xf32> to vector<8x32xf32>
    %cst_34 = arith.constant dense<0.000000e+00> : vector<8x32xf32>
    %100 = tpu.matmul %98, %99, %cst_34 {dimension_numbers = #tpu.dot_dimension_numbers<[1], [0], [0], [1], [0, 0, 1, 1], [], []>} : vector<8x8xf32>, vector<8x32xf32>, vector<8x32xf32> -> vector<8x32xf32>
    %101 = arith.addf %83, %100 : vector<8x32xf32>
    %102 = vector.broadcast %10 : vector<1x32xf32> to vector<8x32xf32>
    %103 = arith.addf %101, %102 : vector<8x32xf32>
    %104 = arith.addf %4, %103 : vector<8x32xf32>
    %cst_35 = arith.constant dense<0.000000e+00> : vector<8xf32>
    %105 = vector.multi_reduction <add>, %104, %cst_35 [1] : vector<8x32xf32> to vector<8xf32>
    %106 = vector.shape_cast %105 : vector<8xf32> to vector<8x1xf32>
    %cst_36 = arith.constant 3.200000e+01 : f32
    %107 = vector.broadcast %cst_36 : f32 to vector<8x1xf32>
    %108 = arith.divf %106, %107 : vector<8x1xf32>
    %109 = vector.broadcast %108 : vector<8x1xf32> to vector<8x32xf32>
    %110 = arith.subf %104, %109 : vector<8x32xf32>
    %111 = arith.mulf %110, %110 : vector<8x32xf32>
    %cst_37 = arith.constant dense<0.000000e+00> : vector<8xf32>
    %112 = vector.multi_reduction <add>, %111, %cst_37 [1] : vector<8x32xf32> to vector<8xf32>
    %113 = vector.shape_cast %112 : vector<8xf32> to vector<8x1xf32>
    %cst_38 = arith.constant 3.200000e+01 : f32
    %114 = vector.broadcast %cst_38 : f32 to vector<8x1xf32>
    %115 = arith.divf %113, %114 : vector<8x1xf32>
    %116 = vector.broadcast %108 : vector<8x1xf32> to vector<8x32xf32>
    %117 = arith.subf %104, %116 : vector<8x32xf32>
    %cst_39 = arith.constant 9.99999974E-6 : f32
    %118 = vector.broadcast %cst_39 : f32 to vector<8x1xf32>
    %119 = arith.addf %115, %118 : vector<8x1xf32>
    %120 = math.rsqrt %119 : vector<8x1xf32>
    %121 = vector.broadcast %120 : vector<8x1xf32> to vector<8x32xf32>
    %122 = arith.mulf %117, %121 : vector<8x32xf32>
    %123 = vector.broadcast %11 : vector<1x32xf32> to vector<8x32xf32>
    %124 = arith.mulf %122, %123 : vector<8x32xf32>
    %125 = vector.broadcast %12 : vector<1x32xf32> to vector<8x32xf32>
    %126 = arith.addf %124, %125 : vector<8x32xf32>
    %c0_40 = arith.constant 0 : index
    %c0_41 = arith.constant 0 : index
    %c0_42 = arith.constant 0 : index
    %127 = vector.load %arg5[%c0_40, %c0_41, %c0_42] : memref<1x32x64xf32, #tpu.memory_space<vmem>>, vector<1x32x64xf32>
    %128 = vector.shape_cast %127 : vector<1x32x64xf32> to vector<32x64xf32>
    %cst_43 = arith.constant dense<0.000000e+00> : vector<8x64xf32>
    %129 = tpu.matmul %126, %128, %cst_43 {dimension_numbers = #tpu.dot_dimension_numbers<[1], [0], [0], [1], [0, 0, 1, 1], [], []>} : vector<8x32xf32>, vector<32x64xf32>, vector<8x64xf32> -> vector<8x64xf32>
    %130 = vector.broadcast %13 : vector<1x64xf32> to vector<8x64xf32>
    %131 = arith.addf %129, %130 : vector<8x64xf32>
    %cst_44 = arith.constant 0.000000e+00 : f32
    %132 = vector.broadcast %cst_44 : f32 to vector<8x64xf32>
    %133 = arith.maximumf %131, %132 : vector<8x64xf32>
    %c0_45 = arith.constant 0 : index
    %c0_46 = arith.constant 0 : index
    %c0_47 = arith.constant 0 : index
    %134 = vector.load %arg6[%c0_45, %c0_46, %c0_47] : memref<1x64x32xf32, #tpu.memory_space<vmem>>, vector<1x64x32xf32>
    %135 = vector.shape_cast %134 : vector<1x64x32xf32> to vector<64x32xf32>
    %cst_48 = arith.constant dense<0.000000e+00> : vector<8x32xf32>
    %136 = tpu.matmul %133, %135, %cst_48 {dimension_numbers = #tpu.dot_dimension_numbers<[1], [0], [0], [1], [0, 0, 1, 1], [], []>} : vector<8x64xf32>, vector<64x32xf32>, vector<8x32xf32> -> vector<8x32xf32>
    %137 = vector.broadcast %14 : vector<1x32xf32> to vector<8x32xf32>
    %138 = arith.addf %136, %137 : vector<8x32xf32>
    %139 = arith.addf %126, %138 : vector<8x32xf32>
    %cst_49 = arith.constant dense<0.000000e+00> : vector<8xf32>
    %140 = vector.multi_reduction <add>, %139, %cst_49 [1] : vector<8x32xf32> to vector<8xf32>
    %141 = vector.shape_cast %140 : vector<8xf32> to vector<8x1xf32>
    %cst_50 = arith.constant 3.200000e+01 : f32
    %142 = vector.broadcast %cst_50 : f32 to vector<8x1xf32>
    %143 = arith.divf %141, %142 : vector<8x1xf32>
    %144 = vector.broadcast %143 : vector<8x1xf32> to vector<8x32xf32>
    %145 = arith.subf %139, %144 : vector<8x32xf32>
    %146 = arith.mulf %145, %145 : vector<8x32xf32>
    %cst_51 = arith.constant dense<0.000000e+00> : vector<8xf32>
    %147 = vector.multi_reduction <add>, %146, %cst_51 [1] : vector<8x32xf32> to vector<8xf32>
    %148 = vector.shape_cast %147 : vector<8xf32> to vector<8x1xf32>
    %cst_52 = arith.constant 3.200000e+01 : f32
    %149 = vector.broadcast %cst_52 : f32 to vector<8x1xf32>
    %150 = arith.divf %148, %149 : vector<8x1xf32>
    %151 = vector.broadcast %143 : vector<8x1xf32> to vector<8x32xf32>
    %152 = arith.subf %139, %151 : vector<8x32xf32>
    %cst_53 = arith.constant 9.99999974E-6 : f32
    %153 = vector.broadcast %cst_53 : f32 to vector<8x1xf32>
    %154 = arith.addf %150, %153 : vector<8x1xf32>
    %155 = math.rsqrt %154 : vector<8x1xf32>
    %156 = vector.broadcast %155 : vector<8x1xf32> to vector<8x32xf32>
    %157 = arith.mulf %152, %156 : vector<8x32xf32>
    %158 = vector.broadcast %15 : vector<1x32xf32> to vector<8x32xf32>
    %159 = arith.mulf %157, %158 : vector<8x32xf32>
    %160 = vector.broadcast %16 : vector<1x32xf32> to vector<8x32xf32>
    %161 = arith.addf %159, %160 : vector<8x32xf32>
    %c0_54 = arith.constant 0 : index
    %c0_55 = arith.constant 0 : index
    %c0_56 = arith.constant 0 : index
    %162 = vector.load %arg8[%c0_54, %c0_55, %c0_56] : memref<1x8x32xf32, #tpu.memory_space<vmem>>, vector<1x8x32xf32>
    %163 = vector.shape_cast %162 : vector<1x8x32xf32> to vector<8x32xf32>
    %164 = vector.shape_cast %161 : vector<8x32xf32> to vector<1x8x32xf32>
    tpu.vector_store %arg8[%c0_54, %c0_55, %c0_56], %164 {strides = array<i32>} : memref<1x8x32xf32, #tpu.memory_space<vmem>>, vector<1x8x32xf32>,
    return
  }
  func.func @transform_0(%arg0: i32, %arg1: i32) -> (i32, i32, i32) {
    %c0_i32 = arith.constant 0 : i32
    %c0_i32_0 = arith.constant 0 : i32
    %c0_i32_1 = arith.constant 0 : i32
    return %arg0, %c0_i32, %c0_i32_0 : i32, i32, i32
  }
  func.func @transform_1(%arg0: i32, %arg1: i32) -> (i32, i32, i32) {
    %c0_i32 = arith.constant 0 : i32
    %c0_i32_0 = arith.constant 0 : i32
    %c0_i32_1 = arith.constant 0 : i32
    return %arg1, %c0_i32, %c0_i32_0 : i32, i32, i32
  }
  func.func @transform_2(%arg0: i32, %arg1: i32) -> (i32, i32, i32) {
    %c0_i32 = arith.constant 0 : i32
    %c0_i32_0 = arith.constant 0 : i32
    %c0_i32_1 = arith.constant 0 : i32
    return %arg1, %c0_i32, %c0_i32_0 : i32, i32, i32
  }
  func.func @transform_3(%arg0: i32, %arg1: i32) -> (i32, i32, i32) {
    %c0_i32 = arith.constant 0 : i32
    %c0_i32_0 = arith.constant 0 : i32
    %c0_i32_1 = arith.constant 0 : i32
    return %arg1, %c0_i32, %c0_i32_0 : i32, i32, i32
  }
  func.func @transform_4(%arg0: i32, %arg1: i32) -> (i32, i32, i32) {
    %c0_i32 = arith.constant 0 : i32
    %c0_i32_0 = arith.constant 0 : i32
    %c0_i32_1 = arith.constant 0 : i32
    return %arg1, %c0_i32, %c0_i32_0 : i32, i32, i32
  }
  func.func @transform_5(%arg0: i32, %arg1: i32) -> (i32, i32, i32) {
    %c0_i32 = arith.constant 0 : i32
    %c0_i32_0 = arith.constant 0 : i32
    %c0_i32_1 = arith.constant 0 : i32
    return %arg1, %c0_i32, %c0_i32_0 : i32, i32, i32
  }
  func.func @transform_6(%arg0: i32, %arg1: i32) -> (i32, i32, i32) {
    %c0_i32 = arith.constant 0 : i32
    %c0_i32_0 = arith.constant 0 : i32
    %c0_i32_1 = arith.constant 0 : i32
    return %arg0, %c0_i32, %c0_i32_0 : i32, i32, i32
  }
}

</mosaic_0001>

<bundles_post_ra>
// kernel: transformer_encoder_forward.1
= control target key start
LH: loop header
LB: loop body
LE: loop exit
PB: predicated region body
PF: predicated region fallthrough
CT: control target
= control target key end

     0   :  { %11 = vsyncpa [#allocation3], 0  ;;  %s2511_s0 = inlined_call_operand.vmem [shape: f32[2,8,32], index: 0, kind: input, shape index: {}]   ;;  %s2512_s1 = inlined_call_operand.vmem [shape: f32[2,32,96], index: 1, kind: input, shape index: {}]   ;;  %s2513_s2 = inlined_call_operand.vmem [shape: f32[2,32,32], index: 2, kind: input, shape index: {}]   ;;  %s2514_s3 = inlined_call_operand.vmem [shape: f32[2,32,64], index: 3, kind: input, shape index: {}]   ;;  %s2515_s4 = inlined_call_operand.vmem [shape: f32[2,64,32], index: 4, kind: input, shape index: {}]   ;;  %s2516_s5 = inlined_call_operand.vmem [shape: f32[2,8,96], index: 5, kind: input, shape index: {}]   ;;  %s2517_s6 = inlined_call_operand.hbm [shape: f32[2,8,32], index: 6, kind: output, shape index: {}]  }
   0x1   :  { %13 = vsyncpa [#allocation3 + $0x1], 0  ;;  %s2209_s21 = smov 0   ;;  %s2211_s22 = smov 0  }
   0x2   :  { %s2213_s23 = smov 0   ;;  %s2215_s24 = smov 0  }
   0x3   :  { %s2217_s25 = smov 0   ;;  %s2219_s26 = smov 0  }
   0x4   :  { %s2221_s27 = smov 0   ;;  %s2223_s28 = smov 0  }
   0x5 LB: > { %2525 = sst [smem:[#allocation5_spill]] %s2130_s21  ;;  %s1774_s29 = sadd.s32 4294967295, %s2158_s28   ;;  %s2158_s28 = sphi %s2223_s28, %s19_s28   ;;  %s2154_s27 = sphi %s2221_s27, %s2543_s27   ;;  %s2150_s26 = sphi %s2219_s26, %s2542_s26   ;;  %s2146_s25 = sphi %s2217_s25, %s2541_s25   ;;  %s2142_s24 = sphi %s2215_s24, %s2540_s24   ;;  %s2138_s23 = sphi %s2213_s23, %s2546_s23   ;;  %s2134_s22 = sphi %s2211_s22, %s2545_s22   ;;  %s2130_s21 = sphi %s2209_s21, %s2544_s21  }
   0x6   : > { %2526 = sst [smem:[#allocation6_spill]] %s2138_s23  ;;  %s1775_s30 = sadd.s32 4294967294, %s2158_s28  }
   0x7   : > { %2527 = sst [smem:[#allocation7_spill]] %s2150_s26  ;;  %s28_s7 = sadd.s32 1, %s2150_s26 }
   0x8   : > { %2528 = sst [smem:[#allocation8_spill]] %s2154_s27  ;;  %p29_p0 = scmp.ge.s32.totalorder %s28_s7, 2 }
   0x9   : > { %s31_s8 = sadd.s32 1, %s2154_s27  ;;  %p204_p1 = scmp.ne.s32.totalorder %s2138_s23, %s2134_s22 }
   0xa   : > { %p205_p2 = scmp.eq.s32.totalorder %s1774_s29, 3  ;;  %s2548_s7 = smov (%p29_p0, %s28_s7), 0 }
   0xb   : > { %2529 = sst [smem:[#allocation9_spill]] %s2548_s7  ;;  %s2550_s8 = smov (!%p29_p0, %s31_s8), %s2154_s27 }
   0xc   : > { %p2258_p3 = por %p205_p2, %p204_p1  ;;  %p210_p4 = scmp.ne.s32.totalorder %s2134_s22, %s2130_s21 }
   0xd   : > { %p33_p5 = scmp.ge.s32.totalorder %s2550_s8, 2  ;;  %p211_p6 = scmp.eq.s32.totalorder %s1775_s30, 3 }
   0xe   : > { %p1778_p7 = scmp.ge.s32.totalorder %s2158_s28, 1  ;;  %p275_p8 = scmp.lt.s32.totalorder %s2158_s28, 5 }
   0xf   : > { %s2552_s8 = smov (%p33_p5, %s2550_s8), 0  ;;  %p2268_p9 = por %p211_p6, %p210_p4 }
  0x10   : > { %2531 = sst [smem:[#allocation10_spill]] %s2552_s8  ;;  %p276_p10 = pnand %p1778_p7, %p275_p8 }
  0x11   : > { %s2532_s10 = scalar_select %p2268_p9, 1, 0 }
  0x12   : > { %s191_s11 = ssub.s32 %s2154_s27, %s2552_s8  ;;  %s194_s12 = sadd.s32 1, %s2138_s23 }
  0x13   : > { %2533 = sst [smem:[#allocation11_spill]] %s2532_s10  ;;  %p192_p11 = scmp.eq.s32.totalorder %s191_s11, 0 }
  0x14   : > { %279 = sbr.rel (%p276_p10) target bundleno = 3496 (0xda8), region = 44  ;;  %s2521_s14 = sand.u32 (!%p276_p10), 1, %s2134_s22  }
  0x15   : > { %s2276_s13 = scalar_select %p192_p11, %s2138_s23, %s194_s12  }
  0x16   : > { %p328_p12 = scmp.lt.s32.totalorder (!%p276_p10), %s2146_s25, 1  ;;  %s1779_s15 = sshll.u32 (!%p276_p10), %s2521_s14, 3 }
  0x17   : > { %2534 = sst [smem:[#allocation12_spill]] %s2276_s13  ;;  %p332_p13 = scmp.lt.s32.totalorder (!%p276_p10), %s2142_s24, 1 }
  0x18   : > { %s2311_s27 = scalar_lea.vmem (!%p276_p10), [#allocation2], %s1779_s15  ;;  %p1790_p0 = scmp.ne.s32.totalorder (!%p276_p10), %s2142_s24, 0 }
  0x19   : > { %s329_s16 = scalar_select %p328_p12, %s2146_s25, 1 }
  0x1a   : > { %s333_s17 = scalar_select %p332_p13, %s2142_s24, 1 }
  0x1b   : > { %s1780_s18 = sshll.u32 %s329_s16, 3 }
  0x1c   : > { %s331_s29 = scalar_lea.vmem %s2511_s0, %s1780_s18  ;;  %s1814_s30 = sshll.u32 %s333_s17, 5 }
  0x1d   : > { %s336_s8 = scalar_lea.vmem %s2512_s1, %s1814_s30  ;;  %s2294_s26 = scalar_lea.vmem %s2513_s2, %s1814_s30 }
  0x1e   : > { %s2299_s23 = scalar_lea.vmem %s2514_s3, %s1814_s30  ;;  %s1817_s16 = sshll.u32 %s333_s17, 6 }
  0x1f   : > { %s2304_s18 = scalar_lea.vmem %s2515_s4, %s1817_s16  ;;  %s1789_s19 = sshll.u32 %s333_s17, 3 }
  0x20   : > { %s2309_s12 = scalar_lea.vmem %s2516_s5, %s1789_s19  ;;  %359 = sbr.rel (%p1790_p0) target bundleno = 39 (0x27), region = 48 }
  0x25   : > { %v360_v0 = vld [vmem:[%s331_s29] sm:$0xff]  ;;  %vm361_vm0 = vcmask 261120  }
  0x26   : > { %362 = vst.msk [vmem:[%s2311_s27] sm:$0xff] %vm361_vm0, %v360_v0 }
  0x27 PF: > { %v368_v1 = vld [vmem:[%s336_s8 + $0x18] sm:$0xff]  ;;  %v2160_v2 = vmov 0.0   ;;  %v367_v3 = vld [vmem:[%s336_s8 + $0x10] sm:$0xff]  ;;  %vm2161_vm1 = vmmov 0   ;;  %v366_v4 = vld [vmem:[%s336_s8 + $0x8] sm:$0xff]  ;;  %vm373_vm2 = vcmask 261120   ;;  %v369_v7 = vlaneseq }
  0x28   : > { %1861 = vmatprep.subr.mxu0 %v2160_v2  ;;  %1869 = vmatprep.mubr.msk.f32.mxu0 %vm2161_vm1, %v2160_v2  ;;  %v365_v5 = vld [vmem:[%s336_s8] sm:$0xff]  ;;  %s2162_s21 = smov 96   ;;  %s2163_s24 = smov 120   ;;  %vm455_vm3 = vcmask 64512   ;;  %v449_v44 = vld [vmem:[%s2294_s26 + $0x8] sm:$0xff]  ;;  %vm1531_vm4 = vcmask 523264  }
  0x29   : > { %1862 = vmatpush3.msra.mxu0 %v368_v1  ;;  %1877 = vmatprep.subr.mxu1 %v2160_v2  ;;  %v2332_v8 = vshrl.u32 %v369_v7, 7  ;;  %v2336_v10 = vld [vmem:[%s2309_s12] sm:$0xff]  ;;  %s2164_s7 = smov 88   ;;  %s2165_s8 = smov 56  }
  0x2a   : > { %1863 = vmatprep.subr.mxu0 %v2160_v2  ;;  %1879 = vmatprep.mubr.msk.f32.mxu1 %vm2161_vm1, %v2160_v2  ;;  %s2166_s10 = smov 64   ;;  %s2167_s13 = smov 80   ;;  %v448_v43 = vld [vmem:[%s2294_s26] sm:$0xff] }
  0x2b   : > { %1864 = vmatpush3.msra.mxu0 %v367_v3  ;;  %v371_v9 = vsub.s32 0, %v2332_v8  ;;  %s2168_s14 = smov 112   ;;  %s2169_s15 = smov 72  }
  0x2c   : > { %1865 = vmatprep.subr.mxu0 %v2160_v2  ;;  %s2170_s17 = smov 104   ;;  %s2171_s29 = smov 48  }
  0x2d   : > { %1866 = vmatpush3.msra.mxu0 %v366_v4  ;;  %v2324_v6 = vld [vmem:[%s2311_s27] sm:$0xff]  ;;  %v372_v11 = vrot.slane %v2336_v10, %v371_v9  ;;  %v450_v9 = vld [vmem:[%s2294_s26 + $0x10] sm:$0xff]  ;;  %s2172_s30 = smov 40   ;;  %s2535_s20 = sand.u32 1, %s2134_s22  }
  0x2e   : > { %1867 = vmatprep.subr.mxu0 %v2160_v2  ;;  %s1631_s11 = scalar_lea.sflag [#allocation3], %s2535_s20 }
  0x2f   : > { %1868 = vmatpush3.msra.mxu0 %v365_v5 }
  0x30   : > { %1870 = vmatmul.mubr.msk.f32.vlgmr.msra.gmra.mxu0 %vm373_vm2, %v2324_v6  ;;  %1872 = vmatprep.subr.mxu0 %v2160_v2 }
  0x31   : > { %1874 = vmatprep.mubr.msk.f32.mxu0 %vm2161_vm1, %v2160_v2 }
  0xf0   : > { %v443_v12 = vpop.f32.mrf.mxu0 }
  0xf1   : > { %v2339_v13 = vadd.f32 %v443_v12, %v372_v11 }
  0xf2   : > { %v1871_v14 = vpop.f32.mrf.mxu0 }
  0xf3   : > { %453 = vrot.lane.b32.xlu0 %v2339_v13, %s2162_s21  ;;  %v2343_v15 = vmul.f32 0.35355338, %v2339_v13  ;;  %s2173_s21 = smov [#allocation2]  }
  0xf5   : > { %618 = vrot.lane.b32.xlu1 %v2343_v15, %s2163_s24  ;;  %s2070_s24 = sshll.u32 %s2173_s21, 4  ;;  %s2071_s24 = int_to_ptr.vmem [resolvable:$false] %s2070_s24 }
  0xf7   : > { %620 = vrot.lane.b32.xlu0 %v2339_v13, %s2164_s7 }
 0x165   : > { %v454_v16 = vpop.permute.xlu0 %453 }
 0x166   : > { %1873 = vmatpush3.xpose.msk.msra.mxu0 %vm455_vm3, %v454_v16 }
 0x167   : > { %1882 = vmatprep.subr.mxu0 %v2160_v2  ;;  %v619_v18 = vpop.permute.xlu1 %618 }
 0x169   : > { %v621_v17 = vpop.permute.xlu0 %620  ;;  %1875 = vmatmul.mubr.msk.f32.vlgmr.msra.gmra.mxu0 %vm455_vm3, %v2343_v15 }
 0x16a   : > { %1883 = vmatpush3.xpose.msk.msra.mxu0 %vm455_vm3, %v621_v17  ;;  %1884 = vmatprep.mubr.msk.f32.mxu0 %vm2161_vm1, %v2160_v2 }
 0x16b   : > { %1892 = vmatprep.subr.mxu0 %v2160_v2 }
 0x16d   : > { %1885 = vmatmul.mubr.msk.f32.vlgmr.msra.gmra.mxu0 %vm455_vm3, %v619_v18 }
 0x16e   : > { %1894 = vmatprep.mubr.msk.f32.mxu0 %vm2161_vm1, %v2160_v2  ;;  %1893 = vmatpush3.msra.mxu0 %v449_v44  ;;  %v1440_v44 = vld [vmem:[%s2299_s23 + $0x18] sm:$0xff] }
 0x16f   : > { %1902 = vmatprep.subr.mxu0 %v2160_v2 }
 0x229   : > { %v527_v19 = vpop.f32.mrf.mxu0 }
 0x22a   : > { %v531_v20 = vsel %vm455_vm3, %v527_v19, -inf }
 0x22b   : > { %532 = vmax.xlane.f32.xlu1 %v531_v20  ;;  %v1876_v21 = vpop.f32.mrf.mxu0 }
 0x22d   : > { %v692_v22 = vpop.f32.mrf.mxu0 }
 0x22e   : > { %v696_v23 = vsel %vm455_vm3, %v692_v22, -inf }
 0x22f   : > { %697 = vmax.xlane.f32.xlu0 %v696_v23  ;;  %v1886_v24 = vpop.f32.mrf.mxu0  ;;  %v451_v23 = vld [vmem:[%s2294_s26 + $0x18] sm:$0xff]  ;;  %s1644_s26 = sshll.u32 %s2311_s27, 4  ;;  %s1645_s26 = int_to_ptr.vmem [resolvable:$true] %s1644_s26 }
 0x230   : > { %s2066_s12 = scalar_lea.vmem %s1645_s26, 128  ;;  %p2073_p5 = scmp.lt.s32.totalorder %s1645_s26, %s2071_s24 }
 0x231   : > { %p2067_p1 = scmp.ne.s32.totalorder %s1645_s26, %s2066_s12 }
 0x233   : > { %p2068_p2 = pnand %p2067_p1, %p2258_p3 }
 0x235   : > { %p2069_p4 = pneg %p2068_p2 }
 0x2b4   : > { %v533_v25 = vpop.xlane.xlu1 %532 }
 0x2b5   : > { %v534_v26 = vsub.f32 %v527_v19, %v533_v25 }
 0x2b7   : > { %v535_v27 = vmul.f32 1.442695, %v534_v26 }
 0x2b8   : > { %v698_v28 = vpop.xlane.xlu0 %697 }
 0x2b9   : > { %2046 = vpow2.f32 %v535_v27  ;;  %v699_v29 = vsub.f32 %v692_v22, %v698_v28 }
 0x2bb   : > { %v700_v30 = vmul.f32 1.442695, %v699_v29 }
 0x2bd   : > { %2048 = vpow2.f32 %v700_v30 }
 0x2c6   : > { %v2047_v31 = vpop.eup %2046 }
 0x2c7   : > { %v537_v32 = vsel %vm455_vm3, %v2047_v31, 0.0 }
 0x2c8   : > { %538 = vadd.xlane.f32.xlu0 %v537_v32 }
 0x2ca   : > { %v2049_v33 = vpop.eup %2048 }
 0x2cb   : > { %v702_v34 = vsel %vm455_vm3, %v2049_v33, 0.0 }
 0x2cc   : > { %703 = vadd.xlane.f32.xlu1 %v702_v34 }
 0x2dd   : > { %707 = vrot.lane.b32.xlu1 %v2339_v13, %s2165_s8 }
 0x2de   : > { %542 = vrot.lane.b32.xlu0 %v2339_v13, %s2166_s10 }
 0x2e1   : > { %931 = vrot.lane.b32.xlu1 %v2339_v13, %s2167_s13 }
 0x2e2   : > { %929 = vrot.lane.b32.xlu0 %v2343_v15, %s2168_s14 }
 0x351   : > { %v539_v35 = vpop.xlane.xlu0 %538 }
 0x352   : > { %2050 = vrcp.f32 %v539_v35 }
 0x355   : > { %v704_v36 = vpop.xlane.xlu1 %703  ;;  %v543_v37 = vpop.permute.xlu0 %542 }
 0x356   : > { %2052 = vrcp.f32 %v704_v36  ;;  %1878 = vmatpush3.msra.mxu1 %v543_v37 }
 0x357   : > { %1887 = vmatprep.subr.mxu1 %v2160_v2 }
 0x359   : > { %v708_v40 = vpop.permute.xlu1 %707  ;;  %v930_v50 = vpop.permute.xlu0 %929 }
 0x35d   : > { %v932_v48 = vpop.permute.xlu1 %931 }
 0x35f   : > { %v2051_v38 = vpop.eup %2050 }
 0x360   : > { %v541_v39 = vmul.f32 %v2051_v38, %v2047_v31  ;;  %v1409_v31 = vsub.s32 1, %v2332_v8 }
 0x362   : > { %1880 = vmatmul.mubr.msk.f32.vlgmr.msra.gmra.mxu1 %vm455_vm3, %v541_v39  ;;  %v1410_v32 = vrot.slane %v2336_v10, %v1409_v31 }
 0x363   : > { %v2053_v41 = vpop.eup %2052  ;;  %1888 = vmatpush3.msra.mxu1 %v708_v40  ;;  %1889 = vmatprep.mubr.msk.f32.mxu1 %vm2161_vm1, %v2160_v2 }
 0x364   : > { %v706_v42 = vmul.f32 %v2053_v41, %v2049_v33  ;;  %1897 = vmatprep.subr.mxu1 %v2160_v2 }
 0x366   : > { %1890 = vmatmul.mubr.msk.f32.vlgmr.msra.gmra.mxu1 %vm455_vm3, %v706_v42 }
 0x367   : > { %1899 = vmatprep.mubr.msk.f32.mxu1 %vm2161_vm1, %v2160_v2  ;;  %1898 = vmatpush3.msra.mxu1 %v448_v43 }
 0x368   : > { %1907 = vmatprep.subr.mxu1 %v2160_v2 }
 0x422   : > { %v614_v45 = vpop.f32.mrf.mxu1 }
 0x423   : > { %1900 = vmatmul.mubr.msk.f32.vlgmr.msra.gmra.mxu1 %vm455_vm3, %v614_v45  ;;  %v1439_v45 = vld [vmem:[%s2299_s23 + $0x10] sm:$0xff] }
 0x424   : > { %v1881_v46 = vpop.f32.mrf.mxu1  ;;  %1909 = vmatprep.mubr.msk.f32.mxu1 %vm2161_vm1, %v2160_v2 }
 0x425   : > { %v1437_v46 = vld [vmem:[%s2299_s23] sm:$0xff] }
 0x426   : > { %v779_v47 = vpop.f32.mrf.mxu1 }
 0x427   : > { %1895 = vmatmul.mubr.msk.f32.vlgmr.msra.gmra.mxu0 %vm455_vm3, %v779_v47  ;;  %v1526_v47 = vld [vmem:[%s2304_s18 + $0x38] sm:$0xff] }
 0x428   : > { %1903 = vmatpush3.xpose.msk.msra.mxu0 %vm455_vm3, %v932_v48  ;;  %v1891_v49 = vpop.f32.mrf.mxu1  ;;  %1904 = vmatprep.mubr.msk.f32.mxu0 %vm2161_vm1, %v2160_v2  ;;  %v1525_v48 = vld [vmem:[%s2304_s18 + $0x30] sm:$0xff] }
 0x429   : > { %1912 = vmatprep.subr.mxu0 %v2160_v2  ;;  %v1524_v49 = vld [vmem:[%s2304_s18 + $0x28] sm:$0xff] }
 0x42b   : > { %1905 = vmatmul.mubr.msk.f32.vlgmr.msra.gmra.mxu0 %vm455_vm3, %v930_v50  ;;  %v1523_v50 = vld [vmem:[%s2304_s18 + $0x20] sm:$0xff] }
 0x42c   : > { %1914 = vmatprep.mubr.msk.f32.mxu0 %vm2161_vm1, %v2160_v2  ;;  %1913 = vmatpush3.msra.mxu0 %v450_v9 }
 0x42d   : > { %1922 = vmatprep.subr.mxu0 %v2160_v2 }
 0x4e3   : > { %v925_v51 = vpop.f32.mrf.mxu1 }
 0x4e5   : > { %v1901_v52 = vpop.f32.mrf.mxu1 }
 0x4e7   : > { %v852_v53 = vpop.f32.mrf.mxu0 }
 0x4e8   : > { %v926_v54 = vadd.f32 %v925_v51, %v852_v53  ;;  %v1522_v51 = vld [vmem:[%s2304_s18 + $0x18] sm:$0xff] }
 0x4e9   : > { %v1896_v55 = vpop.f32.mrf.mxu0 }
 0x4ea   : > { %v1429_v55 = vsub.s32 2, %v2332_v8 }
 0x4eb   : > { %v1003_v56 = vpop.f32.mrf.mxu0 }
 0x4ec   : > { %v1007_v57 = vsel %vm455_vm3, %v1003_v56, -inf }
 0x4ed   : > { %1008 = vmax.xlane.f32.xlu1 %v1007_v57  ;;  %v1906_v58 = vpop.f32.mrf.mxu0  ;;  %v1430_v57 = vrot.slane %v2336_v10, %v1429_v55 }
 0x4fe   : > { %1170 = vrot.lane.b32.xlu1 %v2339_v13, %s2169_s15 }
 0x502   : > { %1168 = vrot.lane.b32.xlu1 %v2343_v15, %s2170_s17 }
 0x576   : > { %v1009_v59 = vpop.xlane.xlu1 %1008 }
 0x577   : > { %v1010_v60 = vsub.f32 %v1003_v56, %v1009_v59  ;;  %v1434_v56 = vsub.s32 3, %v2332_v8 }
 0x579   : > { %v1011_v61 = vmul.f32 1.442695, %v1010_v60  ;;  %v1435_v60 = vrot.slane %v2336_v10, %v1434_v56 }
 0x57a   : > { %v1171_v4 = vpop.permute.xlu1 %1170 }
 0x57b   : > { %2054 = vpow2.f32 %v1011_v61 }
 0x57e   : > { %v1169_v7 = vpop.permute.xlu1 %1168 }
 0x588   : > { %v2055_v62 = vpop.eup %2054 }
 0x589   : > { %v1013_v63 = vsel %vm455_vm3, %v2055_v62, 0.0 }
 0x58a   : > { %1014 = vadd.xlane.f32.xlu0 %v1013_v63  ;;  %v1521_v63 = vld [vmem:[%s2304_s18 + $0x10] sm:$0xff] }
 0x5a0   : > { %1018 = vrot.lane.b32.xlu0 %v2339_v13, %s2171_s29 }
 0x613   : > { %v1015_v0 = vpop.xlane.xlu0 %1014 }
 0x614   : > { %2056 = vrcp.f32 %v1015_v0  ;;  %v1520_v0 = vld [vmem:[%s2304_s18 + $0x8] sm:$0xff] }
 0x617   : > { %v1019_v1 = vpop.permute.xlu0 %1018 }
 0x618   : > { %1908 = vmatpush3.msra.mxu1 %v1019_v1  ;;  %v1519_v1 = vld [vmem:[%s2304_s18] sm:$0xff] }
 0x619   : > { %1917 = vmatprep.subr.mxu1 %v2160_v2 }
 0x621   : > { %v2057_v3 = vpop.eup %2056 }
 0x622   : > { %v1017_v5 = vmul.f32 %v2057_v3, %v2055_v62  ;;  %v1443_v3 = vsub.s32 4, %v2332_v8 }
 0x624   : > { %1910 = vmatmul.mubr.msk.f32.vlgmr.msra.gmra.mxu1 %vm455_vm3, %v1017_v5 }
 0x625   : > { %1918 = vmatpush3.xpose.msk.msra.mxu1 %vm455_vm3, %v1171_v4  ;;  %1919 = vmatprep.mubr.msk.f32.mxu1 %vm2161_vm1, %v2160_v2  ;;  %v1444_v4 = vrot.slane %v2336_v10, %v1443_v3 }
 0x626   : > { %1927 = vmatprep.subr.mxu1 %v2160_v2 }
 0x628   : > { %1920 = vmatmul.mubr.msk.f32.vlgmr.msra.gmra.mxu1 %vm455_vm3, %v1169_v7 }
 0x629   : > { %1929 = vmatprep.mubr.msk.f32.mxu1 %vm2161_vm1, %v2160_v2  ;;  %1928 = vmatpush3.msra.mxu1 %v451_v23 }
 0x62a   : > { %1943 = vmatprep.subr.mxu1 %v2160_v2 }
 0x6e4   : > { %v1090_v11 = vpop.f32.mrf.mxu1 }
 0x6e5   : > { %1915 = vmatmul.mubr.msk.f32.vlgmr.msra.gmra.mxu0 %vm455_vm3, %v1090_v11 }
 0x6e6   : > { %v1911_v12 = vpop.f32.mrf.mxu1  ;;  %1924 = vmatprep.mubr.msk.f32.mxu0 %vm2161_vm1, %v2160_v2 }
 0x6e7   : > { %v1529_v12 = vsub.s32 5, %v2332_v8 }
 0x6e8   : > { %v1242_v14 = vpop.f32.mrf.mxu1 }
 0x6e9   : > { %v1246_v15 = vsel %vm455_vm3, %v1242_v14, -inf }
 0x6ea   : > { %1247 = vmax.xlane.f32.xlu0 %v1246_v15  ;;  %v1921_v16 = vpop.f32.mrf.mxu1 }
 0x700   : > { %1257 = vrot.lane.b32.xlu0 %v2339_v13, %s2172_s30 }
 0x773   : > { %v1248_v17 = vpop.xlane.xlu0 %1247 }
 0x774   : > { %v1249_v18 = vsub.f32 %v1242_v14, %v1248_v17  ;;  %v1530_v14 = vrot.slane %v2336_v10, %v1529_v12 }
 0x776   : > { %v1250_v19 = vmul.f32 1.442695, %v1249_v18 }
 0x777   : > { %v1258_v20 = vpop.permute.xlu0 %1257 }
 0x778   : > { %2058 = vpow2.f32 %v1250_v19  ;;  %1923 = vmatpush3.msra.mxu0 %v1258_v20 }
 0x779   : > { %1932 = vmatprep.subr.mxu0 %v2160_v2 }
 0x785   : > { %v2059_v21 = vpop.eup %2058 }
 0x786   : > { %v1252_v22 = vsel %vm455_vm3, %v2059_v21, 0.0 }
 0x787   : > { %1253 = vadd.xlane.f32.xlu1 %v1252_v22 }
 0x7a5   : > { %v1163_v24 = vpop.f32.mrf.mxu0 }
 0x7a6   : > { %v1167_v25 = vadd.f32 %v1163_v24, %v926_v54 }
 0x7a7   : > { %v1916_v26 = vpop.f32.mrf.mxu0 }
 0x810   : > { %v1254_v13 = vpop.xlane.xlu1 %1253 }
 0x811   : > { %2060 = vrcp.f32 %v1254_v13  ;;  %v1621_v13 = vsub.s32 6, %v2332_v8 }
 0x81e   : > { %v2061_v27 = vpop.eup %2060 }
 0x81f   : > { %v1256_v28 = vmul.f32 %v2061_v27, %v2059_v21  ;;  %v1626_v27 = vsub.s32 7, %v2332_v8 }
 0x821   : > { %1925 = vmatmul.mubr.msk.f32.vlgmr.msra.gmra.mxu0 %vm455_vm3, %v1256_v28  ;;  %v1622_v28 = vrot.slane %v2336_v10, %v1621_v13  ;;  %v1627_v31 = vrot.slane %v2336_v10, %v1626_v27 }
 0x822   : > { %1940 = vmatprep.mubr.msk.f32.mxu0 %vm2161_vm1, %v2160_v2  ;;  %1933 = vmatpush3.msra.mxu0 %v1440_v44 }
 0x823   : > { %1934 = vmatprep.subr.mxu0 %v2160_v2 }
 0x824   : > { %1935 = vmatpush3.msra.mxu0 %v1439_v45 }
 0x825   : > { %1936 = vmatprep.subr.mxu0 %v2160_v2 }
 0x8e1   : > { %v1329_v29 = vpop.f32.mrf.mxu0 }
 0x8e2   : > { %1930 = vmatmul.mubr.msk.f32.vlgmr.msra.gmra.mxu1 %vm455_vm3, %v1329_v29 }
 0x8e3   : > { %v1926_v30 = vpop.f32.mrf.mxu0  ;;  %1959 = vmatprep.mubr.msk.f32.mxu1 %vm2161_vm1, %v2160_v2  ;;  %1944 = vmatpush3.msra.mxu1 %v1526_v47 }
 0x8e4   : > { %1945 = vmatprep.subr.mxu1 %v2160_v2 }
 0x8e5   : > { %1946 = vmatpush3.msra.mxu1 %v1525_v48 }
 0x8e6   : > { %1947 = vmatprep.subr.mxu1 %v2160_v2 }
 0x8e7   : > { %1948 = vmatpush3.msra.mxu1 %v1524_v49 }
 0x8e8   : > { %1949 = vmatprep.subr.mxu1 %v2160_v2 }
 0x8e9   : > { %1950 = vmatpush3.msra.mxu1 %v1523_v50 }
 0x8ea   : > { %1951 = vmatprep.subr.mxu1 %v2160_v2 }
 0x8eb   : > { %1952 = vmatpush3.msra.mxu1 %v1522_v51 }
 0x8ec   : > { %1953 = vmatprep.subr.mxu1 %v2160_v2 }
 0x8ed   : > { %1954 = vmatpush3.msra.mxu1 %v1521_v63 }
 0x8ee   : > { %1955 = vmatprep.subr.mxu1 %v2160_v2 }
 0x8ef   : > { %1956 = vmatpush3.msra.mxu1 %v1520_v0 }
 0x8f0   : > { %1957 = vmatprep.subr.mxu1 %v2160_v2 }
 0x8f1   : > { %1958 = vmatpush3.msra.mxu1 %v1519_v1 }
 0x9a2   : > { %v1402_v33 = vpop.f32.mrf.mxu1 }
 0x9a3   : > { %v1406_v34 = vadd.f32 %v1402_v33, %v1167_v25 }
 0x9a4   : > { %v1931_v35 = vpop.f32.mrf.mxu1 }
 0x9a5   : > { %v1411_v36 = vadd.f32 %v1410_v32, %v1406_v34 }
 0x9a7   : > { %v1412_v37 = vadd.f32 %v1411_v36, %v2324_v6  ;;  %v1438_v6 = vld [vmem:[%s2299_s23 + $0x8] sm:$0xff]  ;;  %s1811_s23 = sshll.u32 %s2146_s25, 7  ;;  %s2072_s25 = scalar_lea.vmem %s2071_s24, 256 }
 0x9a8   : > { %1937 = vmatpush3.msra.mxu0 %v1438_v6  ;;  %s1642_s19 = scalar_lea.hbm %s2517_s6, %s1811_s23  ;;  %p2074_p6 = scmp.lt.s32.totalorder %s2072_s25, %s2066_s12 }
 0x9a9   : > { %v1413_v38 = vsel %vm373_vm2, %v1412_v37, 0.0  ;;  %1938 = vmatprep.subr.mxu0 %v2160_v2 }
 0x9aa   : > { %1414 = vadd.xlane.f32.xlu1 %v1413_v38  ;;  %1939 = vmatpush3.msra.mxu0 %v1437_v46  ;;  %p2075_p7 = por %p2074_p6, %p2073_p5 }
 0x9ac   : > { %p2076_p8 = pnand %p2075_p7, %p2069_p4 }
 0xa33   : > { %v1415_v39 = vpop.xlane.xlu1 %1414 }
 0xa34   : > { %v1417_v40 = vmul.f32 0.03125, %v1415_v39 }
 0xa36   : > { %v1418_v41 = vsub.f32 %v1412_v37, %v1417_v40 }
 0xa38   : > { %v1419_v42 = vmul.f32 %v1418_v41, %v1418_v41 }
 0xa3a   : > { %v1420_v43 = vsel %vm373_vm2, %v1419_v42, 0.0 }
 0xa3b   : > { %1421 = vadd.xlane.f32.xlu1 %v1420_v43 }
 0xac4   : > { %v1422_v52 = vpop.xlane.xlu1 %1421 }
 0xac5   : > { %v1423_v53 = vmul.f32 0.03125, %v1422_v52 }
 0xac7   : > { %v1424_v54 = vadd.f32 1e-05, %v1423_v53 }
 0xac9   : > { %2062 = vrsqrt.f32 %v1424_v54 }
 0xad6   : > { %v2063_v58 = vpop.eup %2062 }
 0xad7   : > { %v1426_v59 = vmul.f32 %v2063_v58, %v1418_v41 }
 0xad9   : > { %v1431_v61 = vmul.f32 %v1430_v57, %v1426_v59 }
 0xadb   : > { %v1436_v62 = vadd.f32 %v1435_v60, %v1431_v61 }
 0xadd   : > { %1941 = vmatmul.mubr.msk.f32.vlgmr.msra.gmra.mxu0 %vm373_vm2, %v1436_v62 }
 0xb9d   : > { %v1514_v5 = vpop.f32.mrf.mxu0 }
 0xb9e   : > { %v1515_v7 = vadd.f32 %v1514_v5, %v1444_v4 }
 0xb9f   : > { %v1942_v9 = vpop.f32.mrf.mxu0 }
 0xba0   : > { %v1518_v11 = vmax.f32 %v1515_v7, 0.0 }
 0xba2   : > { %1960 = vmatmul.mubr.msk.f32.vlgmr.msra.gmra.mxu1 %vm1531_vm4, %v1518_v11 }
 0xc62   : > { %v1601_v15 = vpop.f32.mrf.mxu1 }
 0xc63   : > { %v1602_v16 = vadd.f32 %v1601_v15, %v1530_v14 }
 0xc64   : > { %v1961_v17 = vpop.f32.mrf.mxu1 }
 0xc65   : > { %v1605_v18 = vadd.f32 %v1602_v16, %v1436_v62 }
 0xc67   : > { %v1606_v2 = vsel %vm373_vm2, %v1605_v18, 0.0 }
 0xc68   : > { %1607 = vadd.xlane.f32.xlu1 %v1606_v2 }
 0xcf1   : > { %v1608_v19 = vpop.xlane.xlu1 %1607 }
 0xcf2   : > { %v1609_v20 = vmul.f32 0.03125, %v1608_v19 }
 0xcf4   : > { %v1610_v21 = vsub.f32 %v1605_v18, %v1609_v20 }
 0xcf6   : > { %v1611_v22 = vmul.f32 %v1610_v21, %v1610_v21 }
 0xcf8   : > { %v1612_v23 = vsel %vm373_vm2, %v1611_v22, 0.0 }
 0xcf9   : > { %1613 = vadd.xlane.f32.xlu1 %v1612_v23 }
 0xd82   : > { %v1614_v24 = vpop.xlane.xlu1 %1613 }
 0xd83   : > { %v1615_v25 = vmul.f32 0.03125, %v1614_v24 }
 0xd85   : > { %v1616_v26 = vadd.f32 1e-05, %v1615_v25 }
 0xd87   : > { %2064 = vrsqrt.f32 %v1616_v26 }
 0xd94   : > { %v2065_v29 = vpop.eup %2064 }
 0xd95   : > { %v1618_v30 = vmul.f32 %v2065_v29, %v1610_v21 }
 0xd97   : > { %v1623_v32 = vmul.f32 %v1622_v28, %v1618_v30 }
 0xd99   : > { %v1628_v33 = vadd.f32 %v1627_v31, %v1623_v32 }
 0xd9b   : > { %1629 = vst.msk [vmem:[%s2311_s27] sm:$0xff] %vm373_vm2, %v1628_v33 }
 0xd9c   : > { %2079 = shalt.err (!%p2076_p8)
}
 0xd9d   : > { %s2080_s7 = scalar_lea.hbm %s1642_s19, 128  ;;  %s2084_s10 = scalar_lea.hbm %s2517_s6, 256 }
 0xd9e   : > { %p2081_p10 = scmp.ne.s32.totalorder %s1642_s19, %s2080_s7  ;;  %p2085_p13 = scmp.lt.s32.totalorder %s1642_s19, %s2517_s6 }
 0xd9f   : > { %p2086_p0 = scmp.lt.s32.totalorder %s2084_s10, %s2080_s7 }
 0xda0   : > { %p2082_p11 = pnand %p2081_p10, %p2258_p3 }
 0xda1   : > { %p2087_p1 = por %p2086_p0, %p2085_p13 }
 0xda2   : > { %p2083_p12 = pneg %p2082_p11 }
 0xda4   : > { %p2088_p2 = pnand %p2087_p1, %p2083_p12 }
 0xda6   : > { %2091 = shalt.err (!%p2088_p2)
}
 0xda7   : > { %1962 = dma.vmem_to_hbm [thread:$0]  (%p2258_p3), %s1645_s26, 128, %s1642_s19, %s1631_s11  }
 0xda8 PF: > { %s2536_s15 = sld [smem:[#allocation5_spill]]  ;;  %p1968_p4 = scmp.ge.s32.totalorder %s2158_s28, 2 }
 0xdaa   : > { %p1965_p5 = pnand %p1968_p4, %p2268_p9 }
 0xdac   : > { %p1966_p6 = pneg %p1965_p5 }
 0xdae   : > { %s1656_s29 = sand.u32 1, %s2536_s15  }
 0xdaf   : > { %s1657_s30 = scalar_lea.sflag [#allocation3], %s1656_s29 }
 0xdb0   : > { %2125 = dma.done.wait (%p1966_p6), %s1657_s30, 128  }
 0xdb1   : > { %2127 = vsyncadd (%p1966_p6), %s1657_s30, 4294967168  ;;  %s19_s28 = sadd.s32 1, %s2158_s28   ;;  %s2538_s23 = sld [smem:[#allocation6_spill]] }
 0xdb2   : > { %p16_p7 = scmp.ge.s32.totalorder %s19_s28, 6   ;;  %s2539_s16 = sld [smem:[#allocation12_spill]] }
 0xdb3   : > { %s2540_s24 = sld [smem:[#allocation7_spill]]  ;;  %s2544_s21 = smov %s2134_s22 }
 0xdb4   : > { %s2541_s25 = sld [smem:[#allocation8_spill]]  ;;  %18 = sbr.rel (!%p16_p7) target bundleno = 5 (0x5), region = 98 }
 0xdb5   : > { %s2542_s26 = sld [smem:[#allocation9_spill]] }
 0xdb6   : > { %s2543_s27 = sld [smem:[#allocation10_spill]] }
 0xdb7   : > { %s2545_s22 = smov %s2538_s23 }
 0xdb8   : > { %s2546_s23 = smov %s2539_s16 }
 0xdb9   :  { %1662 = vsyncpa [#allocation3], 1 }
 0xdba   :  { %1664 = vsyncpa [#allocation3 + $0x1], 1 }

</bundles_post_ra>
